<compile_context>
chip_gen: v7x
topology: tpu7x:2x2x1
jax: 0.10.0
libtpu: 0.0.40
codegen_flags: <defaults>
</compile_context>

<pallas_src>
import functools
import math

import jax
import jax.numpy as jnp
from jax.experimental import pallas as pl
from jax.experimental.pallas import tpu as pltpu


def _attention_body(x_ref, w_ref, o_ref, mask_apply, *, H, Dh, scale):
    """Shared kernel body. `mask_apply` maps the (B,Tq,Tk) scores to the
    post-mask scores (either row-sum broadcast or a matmul with the mask)."""
    B, T, C = x_ref.shape
    HD = H * Dh

    # --- fused QKV projection: one MXU matmul over all heads -------------
    x2 = x_ref[...].astype(jnp.float32).reshape(B * T, C)          # (B*T, C)
    w = w_ref[...].astype(jnp.float32)                             # (C, 3*H*Dh)
    qkv = jnp.dot(x2, w, preferred_element_type=jnp.float32)       # (B*T, 3*H*Dh)

    outs = []
    for h in range(H):  # H is tiny & static -> fully unrolled
        q = qkv[:, h * Dh:(h + 1) * Dh].reshape(B, T, Dh) * scale
        k = qkv[:, HD + h * Dh: HD + (h + 1) * Dh].reshape(B, T, Dh)
        v = qkv[:, 2 * HD + h * Dh: 2 * HD + (h + 1) * Dh].reshape(B, T, Dh)

        # scores = (q / sqrt(Dh)) @ k^T        -> (B, Tq, Tk)
        attn = jnp.einsum('bqd,bkd->bqk', q, k,
                          preferred_element_type=jnp.float32)

        # reference: attn = attn @ mask.masked_fill(mask == 0, -inf)
        attn = mask_apply(attn)

        # prob = softmax(attn, dim=1)  -> softmax over the QUERY axis (axis=1).
        amax = jnp.max(attn, axis=1, keepdims=True)
        e = jnp.exp(attn - amax)
        prob = e * pl.reciprocal(jnp.sum(e, axis=1, keepdims=True), approx=False)

        # output = prob @ v
        outs.append(jnp.einsum('bij,bjd->bid', prob, v,
                               preferred_element_type=jnp.float32))

    # Head-major concat along the last dim == torch.concat([...], dim=-1).
    o_ref[...] = jnp.concatenate(outs, axis=-1).astype(o_ref.dtype)


def _mha_fused_kernel(x_ref, w_ref, o_ref, *, H, Dh, scale):
    # Fast path: the module's registered mask is all ones, so
    # attn @ ones(T,T) == broadcast(rowsum_k(attn)) — no O(T^3) matmul.
    def ones_mask(attn):
        return jnp.broadcast_to(jnp.sum(attn, axis=-1, keepdims=True),
                                attn.shape)
    _attention_body(x_ref, w_ref, o_ref, ones_mask, H=H, Dh=Dh, scale=scale)


def _mha_fused_kernel_masked(x_ref, w_ref, mask_ref, o_ref, *, H, Dh, scale):
    # General path: mask already masked_fill'ed in the wrapper (hoisted).
    m = mask_ref[...].astype(jnp.float32)

    def apply(attn):
        return jnp.einsum('bqk,kj->bqj', attn, m,
                          preferred_element_type=jnp.float32)
    _attention_body(x_ref, w_ref, o_ref, apply, H=H, Dh=Dh, scale=scale)


def multi_head_attention(x, wq, wk, wv, mask=None):
    """x: (B,T,C); wq/wk/wv: (H,C,Dh); mask: None (module's all-ones buffer)
    or (T,T).  Returns (B, T, H*Dh)."""
    B, T, C = x.shape
    H, _, Dh = wq.shape
    HD = H * Dh
    scale = 1.0 / math.sqrt(Dh)

    # Pack per-head weights into one lane-dense (C, 3*H*Dh) matrix.
    w_qkv = jnp.concatenate([
        jnp.transpose(wq, (1, 0, 2)).reshape(C, HD),
        jnp.transpose(wk, (1, 0, 2)).reshape(C, HD),
        jnp.transpose(wv, (1, 0, 2)).reshape(C, HD),
    ], axis=-1)

    out_shape = jax.ShapeDtypeStruct((B, T, HD), x.dtype)
    compiler_params = pltpu.CompilerParams(dimension_semantics=("arbitrary",))

    if mask is None:
        kernel = functools.partial(_mha_fused_kernel, H=H, Dh=Dh, scale=scale)
        return pl.pallas_call(
            kernel,
            out_shape=out_shape,
            grid_spec=pltpu.PrefetchScalarGridSpec(
                num_scalar_prefetch=0,
                grid=(1,),  # single invocation: all heads fused
                in_specs=[
                    pl.BlockSpec((B, T, C), lambda i: (0, 0, 0)),    # x (full)
                    pl.BlockSpec((C, 3 * HD), lambda i: (0, 0)),     # W_qkv
                ],
                out_specs=pl.BlockSpec((B, T, HD), lambda i: (0, 0, 0)),
            ),
            compiler_params=compiler_params,
        )(x, w_qkv)

    # General-mask path: hoist masked_fill out of the kernel.
    m = jnp.where(mask == 0, -jnp.inf, mask).astype(jnp.float32)
    kernel = functools.partial(_mha_fused_kernel_masked, H=H, Dh=Dh, scale=scale)
    return pl.pallas_call(
        kernel,
        out_shape=out_shape,
        grid_spec=pltpu.PrefetchScalarGridSpec(
            num_scalar_prefetch=0,
            grid=(1,),
            in_specs=[
                pl.BlockSpec((B, T, C), lambda i: (0, 0, 0)),        # x (full)
                pl.BlockSpec((C, 3 * HD), lambda i: (0, 0)),         # W_qkv
                pl.BlockSpec((T, T), lambda i: (0, 0)),              # mask
            ],
            out_specs=pl.BlockSpec((B, T, HD), lambda i: (0, 0, 0)),
        ),
        compiler_params=compiler_params,
    )(x, w_qkv, m)


def _reference(x, wq, wk, wv, mask):
    """Pure-JAX replica of the PyTorch forward, for verification."""
    H, _, Dh = wq.shape
    outs = []
    for h in range(H):
        q = x @ wq[h]
        k = x @ wk[h]
        v = x @ wv[h]
        attn = q @ jnp.swapaxes(k, -2, -1) / math.sqrt(Dh)
        m = jnp.where(mask == 0.0, -jnp.inf, mask)
        attn = attn @ m
        prob = jax.nn.softmax(attn, axis=1)
        outs.append(prob @ v)
    return jnp.concatenate(outs, axis=-1)


if __name__ == "__main__":
    # Small shapes consistent with the module: chunk_size == T.
    B, T, C = 2, 8, 16          # batch, sequence (== config.chunk_size), in_c
    nb_head, d_out = 4, 32
    Dh = d_out // nb_head

    key = jax.random.PRNGKey(0)
    kx, kq, kk, kv = jax.random.split(key, 4)
    x = jax.random.normal(kx, (B, T, C), dtype=jnp.float32)

    # Deterministic nn.Linear-style init (uniform in +/- 1/sqrt(fan_in)),
    # stored already transposed as (H, in_c, d_head).
    bound = 1.0 / math.sqrt(C)
    wq = jax.random.uniform(kq, (nb_head, C, Dh), jnp.float32, -bound, bound)
    wk = jax.random.uniform(kk, (nb_head, C, Dh), jnp.float32, -bound, bound)
    wv = jax.random.uniform(kv, (nb_head, C, Dh), jnp.float32, -bound, bound)
    mask = jnp.ones((T, T), dtype=jnp.float32)   # register_buffer('mask', ones)

    ref = _reference(x, wq, wk, wv, mask)

    # Fast path (module semantics: registered all-ones mask).
    out_fast = jax.block_until_ready(multi_head_attention(x, wq, wk, wv))
    # General-mask path (explicit mask, masked_fill hoisted to wrapper).
    out_mask = jax.block_until_ready(multi_head_attention(x, wq, wk, wv, mask))

    assert out_fast.shape == (B, T, d_out), out_fast.shape
    assert out_mask.shape == (B, T, d_out), out_mask.shape
    assert jnp.allclose(out_fast, ref, atol=1e-5, rtol=1e-5), "fast path mismatch"
    assert jnp.allclose(out_mask, ref, atol=1e-5, rtol=1e-5), "mask path mismatch"
    print("KERNEL_OK")
</pallas_src>

<mosaic_0001>
module attributes {stable_mosaic.version = 11 : i64} {
  func.func @_mha_fused_kernel(%arg0: i32, %arg1: memref<2x8x16xf32, #tpu.memory_space<vmem>>, %arg2: memref<16x96xf32, #tpu.memory_space<vmem>>, %arg3: memref<2x8x32xf32, #tpu.memory_space<vmem>>) attributes {dimension_semantics = [#tpu.dimension_semantics<arbitrary>], iteration_bounds = array<i64: 1>, scalar_prefetch = 0 : i64, scratch_operands = 0 : i64, tpu.core_type = #tpu.core_type<tc>, window_params = [{pipeline_mode = #tpu.pipeline_mode<synchronous>, transform_indices = @transform_0, window_bounds = array<i64: 2, 8, 16>}, {pipeline_mode = #tpu.pipeline_mode<synchronous>, transform_indices = @transform_1, window_bounds = array<i64: 16, 96>}, {pipeline_mode = #tpu.pipeline_mode<synchronous>, transform_indices = @transform_2, window_bounds = array<i64: 2, 8, 32>}]} {
    %c0 = arith.constant 0 : index
    %c0_0 = arith.constant 0 : index
    %c0_1 = arith.constant 0 : index
    %0 = vector.load %arg1[%c0, %c0_0, %c0_1] : memref<2x8x16xf32, #tpu.memory_space<vmem>>, vector<2x8x16xf32>
    %1 = vector.shape_cast %0 : vector<2x8x16xf32> to vector<16x16xf32>
    %c0_2 = arith.constant 0 : index
    %c0_3 = arith.constant 0 : index
    %2 = vector.load %arg2[%c0_2, %c0_3] : memref<16x96xf32, #tpu.memory_space<vmem>>, vector<16x96xf32>
    %cst = arith.constant dense<0.000000e+00> : vector<16x96xf32>
    %3 = tpu.matmul %1, %2, %cst {dimension_numbers = #tpu.dot_dimension_numbers<[1], [0], [0], [1], [0, 0, 1, 1], [], []>} : vector<16x16xf32>, vector<16x96xf32>, vector<16x96xf32> -> vector<16x96xf32>
    %4 = vector.extract_strided_slice %3 {offsets = [0, 0], sizes = [16, 8], strides = [1, 1]} : vector<16x96xf32> to vector<16x8xf32>
    %5 = vector.shape_cast %4 : vector<16x8xf32> to vector<2x8x8xf32>
    %cst_4 = arith.constant 0.353553385 : f32
    %6 = vector.broadcast %cst_4 : f32 to vector<2x8x8xf32>
    %7 = arith.mulf %5, %6 : vector<2x8x8xf32>
    %8 = vector.extract_strided_slice %3 {offsets = [0, 32], sizes = [16, 8], strides = [1, 1]} : vector<16x96xf32> to vector<16x8xf32>
    %9 = vector.shape_cast %8 : vector<16x8xf32> to vector<2x8x8xf32>
    %10 = vector.extract_strided_slice %3 {offsets = [0, 64], sizes = [16, 8], strides = [1, 1]} : vector<16x96xf32> to vector<16x8xf32>
    %11 = vector.shape_cast %10 : vector<16x8xf32> to vector<2x8x8xf32>
    "tpu.trace_start"() <{level = 10 : i32, message = "bqd,bkd->bqk"}> : () -> ()
    %cst_5 = arith.constant dense<0.000000e+00> : vector<2x8x8xf32>
    %12 = tpu.matmul %7, %9, %cst_5 {dimension_numbers = #tpu.dot_dimension_numbers<[2], [2], [1], [1], [0, 0, 0, 1, 1, 1], [0], [0]>} : vector<2x8x8xf32>, vector<2x8x8xf32>, vector<2x8x8xf32> -> vector<2x8x8xf32>
    "tpu.trace_stop"() : () -> ()
    %cst_6 = arith.constant dense<0.000000e+00> : vector<2x8xf32>
    %13 = vector.multi_reduction <add>, %12, %cst_6 [2] : vector<2x8x8xf32> to vector<2x8xf32>
    %14 = vector.shape_cast %13 : vector<2x8xf32> to vector<2x8x1xf32>
    %15 = vector.shape_cast %14 : vector<2x8x1xf32> to vector<2x8x1xf32>
    %16 = vector.broadcast %15 : vector<2x8x1xf32> to vector<2x8x8xf32>
    %cst_7 = arith.constant dense<0xFF800000> : vector<2x8xf32>
    %17 = vector.multi_reduction <maximumf>, %16, %cst_7 [1] : vector<2x8x8xf32> to vector<2x8xf32>
    %18 = vector.shape_cast %17 : vector<2x8xf32> to vector<2x1x8xf32>
    %19 = vector.broadcast %18 : vector<2x1x8xf32> to vector<2x8x8xf32>
    %20 = arith.subf %16, %19 : vector<2x8x8xf32>
    %21 = math.exp %20 : vector<2x8x8xf32>
    %cst_8 = arith.constant dense<0.000000e+00> : vector<2x8xf32>
    %22 = vector.multi_reduction <add>, %21, %cst_8 [1] : vector<2x8x8xf32> to vector<2x8xf32>
    %23 = vector.shape_cast %22 : vector<2x8xf32> to vector<2x1x8xf32>
    %24 = tpu.reciprocal %23 : vector<2x1x8xf32> -> vector<2x1x8xf32>
    %25 = vector.broadcast %24 : vector<2x1x8xf32> to vector<2x8x8xf32>
    %26 = arith.mulf %21, %25 : vector<2x8x8xf32>
    "tpu.trace_start"() <{level = 10 : i32, message = "bij,bjd->bid"}> : () -> ()
    %cst_9 = arith.constant dense<0.000000e+00> : vector<2x8x8xf32>
    %27 = tpu.matmul %26, %11, %cst_9 {dimension_numbers = #tpu.dot_dimension_numbers<[2], [1], [1], [2], [0, 0, 0, 1, 1, 2], [0], [0]>} : vector<2x8x8xf32>, vector<2x8x8xf32>, vector<2x8x8xf32> -> vector<2x8x8xf32>
    "tpu.trace_stop"() : () -> ()
    %28 = vector.extract_strided_slice %3 {offsets = [0, 8], sizes = [16, 8], strides = [1, 1]} : vector<16x96xf32> to vector<16x8xf32>
    %29 = vector.shape_cast %28 : vector<16x8xf32> to vector<2x8x8xf32>
    %cst_10 = arith.constant 0.353553385 : f32
    %30 = vector.broadcast %cst_10 : f32 to vector<2x8x8xf32>
    %31 = arith.mulf %29, %30 : vector<2x8x8xf32>
    %32 = vector.extract_strided_slice %3 {offsets = [0, 40], sizes = [16, 8], strides = [1, 1]} : vector<16x96xf32> to vector<16x8xf32>
    %33 = vector.shape_cast %32 : vector<16x8xf32> to vector<2x8x8xf32>
    %34 = vector.extract_strided_slice %3 {offsets = [0, 72], sizes = [16, 8], strides = [1, 1]} : vector<16x96xf32> to vector<16x8xf32>
    %35 = vector.shape_cast %34 : vector<16x8xf32> to vector<2x8x8xf32>
    "tpu.trace_start"() <{level = 10 : i32, message = "bqd,bkd->bqk"}> : () -> ()
    %cst_11 = arith.constant dense<0.000000e+00> : vector<2x8x8xf32>
    %36 = tpu.matmul %31, %33, %cst_11 {dimension_numbers = #tpu.dot_dimension_numbers<[2], [2], [1], [1], [0, 0, 0, 1, 1, 1], [0], [0]>} : vector<2x8x8xf32>, vector<2x8x8xf32>, vector<2x8x8xf32> -> vector<2x8x8xf32>
    "tpu.trace_stop"() : () -> ()
    %cst_12 = arith.constant dense<0.000000e+00> : vector<2x8xf32>
    %37 = vector.multi_reduction <add>, %36, %cst_12 [2] : vector<2x8x8xf32> to vector<2x8xf32>
    %38 = vector.shape_cast %37 : vector<2x8xf32> to vector<2x8x1xf32>
    %39 = vector.shape_cast %38 : vector<2x8x1xf32> to vector<2x8x1xf32>
    %40 = vector.broadcast %39 : vector<2x8x1xf32> to vector<2x8x8xf32>
    %cst_13 = arith.constant dense<0xFF800000> : vector<2x8xf32>
    %41 = vector.multi_reduction <maximumf>, %40, %cst_13 [1] : vector<2x8x8xf32> to vector<2x8xf32>
    %42 = vector.shape_cast %41 : vector<2x8xf32> to vector<2x1x8xf32>
    %43 = vector.broadcast %42 : vector<2x1x8xf32> to vector<2x8x8xf32>
    %44 = arith.subf %40, %43 : vector<2x8x8xf32>
    %45 = math.exp %44 : vector<2x8x8xf32>
    %cst_14 = arith.constant dense<0.000000e+00> : vector<2x8xf32>
    %46 = vector.multi_reduction <add>, %45, %cst_14 [1] : vector<2x8x8xf32> to vector<2x8xf32>
    %47 = vector.shape_cast %46 : vector<2x8xf32> to vector<2x1x8xf32>
    %48 = tpu.reciprocal %47 : vector<2x1x8xf32> -> vector<2x1x8xf32>
    %49 = vector.broadcast %48 : vector<2x1x8xf32> to vector<2x8x8xf32>
    %50 = arith.mulf %45, %49 : vector<2x8x8xf32>
    "tpu.trace_start"() <{level = 10 : i32, message = "bij,bjd->bid"}> : () -> ()
    %cst_15 = arith.constant dense<0.000000e+00> : vector<2x8x8xf32>
    %51 = tpu.matmul %50, %35, %cst_15 {dimension_numbers = #tpu.dot_dimension_numbers<[2], [1], [1], [2], [0, 0, 0, 1, 1, 2], [0], [0]>} : vector<2x8x8xf32>, vector<2x8x8xf32>, vector<2x8x8xf32> -> vector<2x8x8xf32>
    "tpu.trace_stop"() : () -> ()
    %52 = vector.extract_strided_slice %3 {offsets = [0, 16], sizes = [16, 8], strides = [1, 1]} : vector<16x96xf32> to vector<16x8xf32>
    %53 = vector.shape_cast %52 : vector<16x8xf32> to vector<2x8x8xf32>
    %cst_16 = arith.constant 0.353553385 : f32
    %54 = vector.broadcast %cst_16 : f32 to vector<2x8x8xf32>
    %55 = arith.mulf %53, %54 : vector<2x8x8xf32>
    %56 = vector.extract_strided_slice %3 {offsets = [0, 48], sizes = [16, 8], strides = [1, 1]} : vector<16x96xf32> to vector<16x8xf32>
    %57 = vector.shape_cast %56 : vector<16x8xf32> to vector<2x8x8xf32>
    %58 = vector.extract_strided_slice %3 {offsets = [0, 80], sizes = [16, 8], strides = [1, 1]} : vector<16x96xf32> to vector<16x8xf32>
    %59 = vector.shape_cast %58 : vector<16x8xf32> to vector<2x8x8xf32>
    "tpu.trace_start"() <{level = 10 : i32, message = "bqd,bkd->bqk"}> : () -> ()
    %cst_17 = arith.constant dense<0.000000e+00> : vector<2x8x8xf32>
    %60 = tpu.matmul %55, %57, %cst_17 {dimension_numbers = #tpu.dot_dimension_numbers<[2], [2], [1], [1], [0, 0, 0, 1, 1, 1], [0], [0]>} : vector<2x8x8xf32>, vector<2x8x8xf32>, vector<2x8x8xf32> -> vector<2x8x8xf32>
    "tpu.trace_stop"() : () -> ()
    %cst_18 = arith.constant dense<0.000000e+00> : vector<2x8xf32>
    %61 = vector.multi_reduction <add>, %60, %cst_18 [2] : vector<2x8x8xf32> to vector<2x8xf32>
    %62 = vector.shape_cast %61 : vector<2x8xf32> to vector<2x8x1xf32>
    %63 = vector.shape_cast %62 : vector<2x8x1xf32> to vector<2x8x1xf32>
    %64 = vector.broadcast %63 : vector<2x8x1xf32> to vector<2x8x8xf32>
    %cst_19 = arith.constant dense<0xFF800000> : vector<2x8xf32>
    %65 = vector.multi_reduction <maximumf>, %64, %cst_19 [1] : vector<2x8x8xf32> to vector<2x8xf32>
    %66 = vector.shape_cast %65 : vector<2x8xf32> to vector<2x1x8xf32>
    %67 = vector.broadcast %66 : vector<2x1x8xf32> to vector<2x8x8xf32>
    %68 = arith.subf %64, %67 : vector<2x8x8xf32>
    %69 = math.exp %68 : vector<2x8x8xf32>
    %cst_20 = arith.constant dense<0.000000e+00> : vector<2x8xf32>
    %70 = vector.multi_reduction <add>, %69, %cst_20 [1] : vector<2x8x8xf32> to vector<2x8xf32>
    %71 = vector.shape_cast %70 : vector<2x8xf32> to vector<2x1x8xf32>
    %72 = tpu.reciprocal %71 : vector<2x1x8xf32> -> vector<2x1x8xf32>
    %73 = vector.broadcast %72 : vector<2x1x8xf32> to vector<2x8x8xf32>
    %74 = arith.mulf %69, %73 : vector<2x8x8xf32>
    "tpu.trace_start"() <{level = 10 : i32, message = "bij,bjd->bid"}> : () -> ()
    %cst_21 = arith.constant dense<0.000000e+00> : vector<2x8x8xf32>
    %75 = tpu.matmul %74, %59, %cst_21 {dimension_numbers = #tpu.dot_dimension_numbers<[2], [1], [1], [2], [0, 0, 0, 1, 1, 2], [0], [0]>} : vector<2x8x8xf32>, vector<2x8x8xf32>, vector<2x8x8xf32> -> vector<2x8x8xf32>
    "tpu.trace_stop"() : () -> ()
    %76 = vector.extract_strided_slice %3 {offsets = [0, 24], sizes = [16, 8], strides = [1, 1]} : vector<16x96xf32> to vector<16x8xf32>
    %77 = vector.shape_cast %76 : vector<16x8xf32> to vector<2x8x8xf32>
    %cst_22 = arith.constant 0.353553385 : f32
    %78 = vector.broadcast %cst_22 : f32 to vector<2x8x8xf32>
    %79 = arith.mulf %77, %78 : vector<2x8x8xf32>
    %80 = vector.extract_strided_slice %3 {offsets = [0, 56], sizes = [16, 8], strides = [1, 1]} : vector<16x96xf32> to vector<16x8xf32>
    %81 = vector.shape_cast %80 : vector<16x8xf32> to vector<2x8x8xf32>
    %82 = vector.extract_strided_slice %3 {offsets = [0, 88], sizes = [16, 8], strides = [1, 1]} : vector<16x96xf32> to vector<16x8xf32>
    %83 = vector.shape_cast %82 : vector<16x8xf32> to vector<2x8x8xf32>
    "tpu.trace_start"() <{level = 10 : i32, message = "bqd,bkd->bqk"}> : () -> ()
    %cst_23 = arith.constant dense<0.000000e+00> : vector<2x8x8xf32>
    %84 = tpu.matmul %79, %81, %cst_23 {dimension_numbers = #tpu.dot_dimension_numbers<[2], [2], [1], [1], [0, 0, 0, 1, 1, 1], [0], [0]>} : vector<2x8x8xf32>, vector<2x8x8xf32>, vector<2x8x8xf32> -> vector<2x8x8xf32>
    "tpu.trace_stop"() : () -> ()
    %cst_24 = arith.constant dense<0.000000e+00> : vector<2x8xf32>
    %85 = vector.multi_reduction <add>, %84, %cst_24 [2] : vector<2x8x8xf32> to vector<2x8xf32>
    %86 = vector.shape_cast %85 : vector<2x8xf32> to vector<2x8x1xf32>
    %87 = vector.shape_cast %86 : vector<2x8x1xf32> to vector<2x8x1xf32>
    %88 = vector.broadcast %87 : vector<2x8x1xf32> to vector<2x8x8xf32>
    %cst_25 = arith.constant dense<0xFF800000> : vector<2x8xf32>
    %89 = vector.multi_reduction <maximumf>, %88, %cst_25 [1] : vector<2x8x8xf32> to vector<2x8xf32>
    %90 = vector.shape_cast %89 : vector<2x8xf32> to vector<2x1x8xf32>
    %91 = vector.broadcast %90 : vector<2x1x8xf32> to vector<2x8x8xf32>
    %92 = arith.subf %88, %91 : vector<2x8x8xf32>
    %93 = math.exp %92 : vector<2x8x8xf32>
    %cst_26 = arith.constant dense<0.000000e+00> : vector<2x8xf32>
    %94 = vector.multi_reduction <add>, %93, %cst_26 [1] : vector<2x8x8xf32> to vector<2x8xf32>
    %95 = vector.shape_cast %94 : vector<2x8xf32> to vector<2x1x8xf32>
    %96 = tpu.reciprocal %95 : vector<2x1x8xf32> -> vector<2x1x8xf32>
    %97 = vector.broadcast %96 : vector<2x1x8xf32> to vector<2x8x8xf32>
    %98 = arith.mulf %93, %97 : vector<2x8x8xf32>
    "tpu.trace_start"() <{level = 10 : i32, message = "bij,bjd->bid"}> : () -> ()
    %cst_27 = arith.constant dense<0.000000e+00> : vector<2x8x8xf32>
    %99 = tpu.matmul %98, %83, %cst_27 {dimension_numbers = #tpu.dot_dimension_numbers<[2], [1], [1], [2], [0, 0, 0, 1, 1, 2], [0], [0]>} : vector<2x8x8xf32>, vector<2x8x8xf32>, vector<2x8x8xf32> -> vector<2x8x8xf32>
    "tpu.trace_stop"() : () -> ()
    %100 = tpu.concatenate %27, %51, %75, %99 in 2 : vector<2x8x8xf32>, vector<2x8x8xf32>, vector<2x8x8xf32>, vector<2x8x8xf32> -> vector<2x8x32xf32>
    %c0_28 = arith.constant 0 : index
    %c0_29 = arith.constant 0 : index
    %c0_30 = arith.constant 0 : index
    %101 = vector.load %arg3[%c0_28, %c0_29, %c0_30] : memref<2x8x32xf32, #tpu.memory_space<vmem>>, vector<2x8x32xf32>
    tpu.vector_store %arg3[%c0_28, %c0_29, %c0_30], %100 {strides = array<i32>} : memref<2x8x32xf32, #tpu.memory_space<vmem>>, vector<2x8x32xf32>,
    return
  }
  func.func @transform_0(%arg0: i32) -> (i32, i32, i32) {
    %c0_i32 = arith.constant 0 : i32
    %c0_i32_0 = arith.constant 0 : i32
    %c0_i32_1 = arith.constant 0 : i32
    %c0_i32_2 = arith.constant 0 : i32
    return %c0_i32, %c0_i32_0, %c0_i32_1 : i32, i32, i32
  }
  func.func @transform_1(%arg0: i32) -> (i32, i32) {
    %c0_i32 = arith.constant 0 : i32
    %c0_i32_0 = arith.constant 0 : i32
    %c0_i32_1 = arith.constant 0 : i32
    return %c0_i32, %c0_i32_0 : i32, i32
  }
  func.func @transform_2(%arg0: i32) -> (i32, i32, i32) {
    %c0_i32 = arith.constant 0 : i32
    %c0_i32_0 = arith.constant 0 : i32
    %c0_i32_1 = arith.constant 0 : i32
    %c0_i32_2 = arith.constant 0 : i32
    return %c0_i32, %c0_i32_0, %c0_i32_1 : i32, i32, i32
  }
}

</mosaic_0001>

<bundles_post_ra>
// kernel: tpu_custom_call.1
= control target key start
LH: loop header
LB: loop body
LE: loop exit
PB: predicated region body
PF: predicated region fallthrough
CT: control target
= control target key end

     0   :  { %7 = vsyncpa [#allocation3], 0  ;;  %s2066_s0 = inlined_call_operand.hbm [shape: f32[2,8,16], index: 0, kind: input, shape index: {}]   ;;  %s2067_s1 = inlined_call_operand.hbm [shape: f32[16,96], index: 1, kind: input, shape index: {}]   ;;  %s2068_s2 = inlined_call_operand.hbm [shape: f32[2,8,32], index: 2, kind: output, shape index: {}]  }
   0x1   :  { %8 = vsyncpa [#allocation6], 0 }
   0x2   :  { %9 = vsyncpa [#allocation4], 0  ;;  %s1850_s9 = smov [#allocation2]   ;;  %s1778_s13 = scalar_lea.hbm %s2066_s0, 256 }
   0x3   :  { %s15_s10 = sshll.u32 %s1850_s9, 4  ;;  %p1779_p0 = scmp.ne.s32.totalorder %s2066_s0, %s1778_s13  ;;  %s16_s10 = int_to_ptr.vmem [resolvable:$true] %s15_s10 }
   0x4   :  { %p1782_p1 = scmp.lt.u32.totalorder %s1778_s13, %s2066_s0 }
   0x6   :  { %p1784_p2 = pnand %p1782_p1, %p1779_p0 }
   0x8   :  { %1787 = shalt.err (!%p1784_p2)
}
   0x9   :  { %s1788_s18 = scalar_lea.vmem %s16_s10, 256  ;;  %p1793_p4 = scmp.lt.s32.totalorder %s16_s10, %s16_s10 }
   0xa   :  { %p1789_p3 = scmp.ne.s32.totalorder %s16_s10, %s1788_s18  ;;  %p1794_p5 = scmp.lt.s32.totalorder %s1788_s18, %s1788_s18 }
   0xc   :  { %p1795_p6 = por %p1794_p5, %p1793_p4 }
   0xe   :  { %p1796_p7 = pnand %p1795_p6, %p1789_p3 }
  0x10   :  { %1799 = shalt.err (!%p1796_p7)
}
  0x11   :  { %s1851_s19 = smov 128   ;;  %s1852_s20 = smov 8  }
  0x12   :  { %21 = dma.hbm_to_vmem [thread:$0]  %s2066_s0, 256, %s16_s10, [#allocation3], %s1851_s19, %s1851_s19, %s1852_s20  }
  0x13   :  { %s1853_s23 = smov [#allocation5]   ;;  %s1800_s27 = scalar_lea.hbm %s2067_s1, 256 }
  0x14   :  { %s27_s24 = sshll.u32 %s1853_s23, 4  ;;  %p1801_p8 = scmp.ne.s32.totalorder %s2067_s1, %s1800_s27  ;;  %s28_s24 = int_to_ptr.vmem [resolvable:$true] %s27_s24 }
  0x15   :  { %p1804_p9 = scmp.lt.u32.totalorder %s1800_s27, %s2067_s1 }
  0x17   :  { %p1806_p10 = pnand %p1804_p9, %p1801_p8 }
  0x19   :  { %1809 = shalt.err (!%p1806_p10)
}
  0x1a   :  { %s1810_s4 = scalar_lea.vmem %s28_s24, 256  ;;  %p1815_p12 = scmp.lt.s32.totalorder %s28_s24, %s28_s24 }
  0x1b   :  { %p1811_p11 = scmp.ne.s32.totalorder %s28_s24, %s1810_s4  ;;  %p1816_p13 = scmp.lt.s32.totalorder %s1810_s4, %s1810_s4 }
  0x1d   :  { %p1817_p0 = por %p1816_p13, %p1815_p12 }
  0x1f   :  { %p1818_p1 = pnand %p1817_p0, %p1811_p11 }
  0x21   :  { %1821 = shalt.err (!%p1818_p1)
}
  0x22   :  { %33 = dma.hbm_to_vmem [thread:$0]  %s2067_s1, 256, %s28_s24, [#allocation6], %s1851_s19, %s1851_s19, %s1852_s20  }
  0x23   :  { %1844 = dma.done.wait [#allocation3], 256  }
  0x24   :  { %1845 = vsyncadd [#allocation3], 4294967040 }
  0x25   :  { %1846 = dma.done.wait [#allocation6], 256  }
  0x26   :  { %1847 = vsyncadd [#allocation6], 4294967040  ;;  %vm44_vm0 = vcmask 130048   ;;  %v42_v0 = vld [vmem:[#allocation5] sm:$0xff]  ;;  %v43_v1 = vld [vmem:[#allocation5 + $0x8] sm:$0xff]  ;;  %v1854_v5 = vmov 0.0  }
  0x27   :  { %v40_v2 = vld [vmem:[#allocation2] sm:$0xff]  ;;  %v1722_v3 = vpack.c.bf16 %v43_v1, %v42_v0  ;;  %v41_v4 = vld [vmem:[#allocation2 + $0x8] sm:$0xff]  ;;  %1642 = vmatprep.subr.mxu1 %v1854_v5  ;;  %vm1855_vm1 = vmmov 0   ;;  %s1856_s1 = smov 96   ;;  %s1857_s6 = smov 64   ;;  %vm131_vm2 = vcmask 64512  }
  0x28   :  { %1639 = vmatprep.mubr.msk.f32.mxu0 %vm44_vm0, %v40_v2  ;;  %1644 = vmatprep.mubr.msk.f32.mxu1 %vm1855_vm1, %v1854_v5  ;;  %s1858_s7 = smov 88   ;;  %s1859_s8 = smov 120   ;;  %vm1549_vm3 = vcmask 195584   ;;  %vm1552_vm4 = vcmask 261120  }
  0x29   :  { %1723 = vmatprep.subr.bf16.mxu0 %v1722_v3  ;;  %s1860_s9 = smov 56   ;;  %s1861_s10 = smov 80  }
  0x2a   :  { %1725 = vmatpush3.bf16.msra.mxu0 %v1722_v3  ;;  %s1862_s11 = smov 112   ;;  %s1863_s12 = smov 48  }
  0x2b   :  { %1647 = vmatprep.subr.mxu0 %v1854_v5  ;;  %s1864_s13 = smov 72   ;;  %s1865_s14 = smov 104  }
  0x2c   :  { %s1866_s15 = smov 40   ;;  %s1867_s16 = smov 16  }
  0x2d   :  { %1640 = vmatmul.mubr.msk.f32.vlgmr.msra.gmra.mrb[0].mxu0 %vm44_vm0, %v41_v4  ;;  %s1868_s17 = smov 24   ;;  %s1869_s18 = smov [#allocation7]  }
  0x2e   :  { %1649 = vmatprep.mubr.msk.f32.mxu0 %vm1855_vm1, %v1854_v5  ;;  %s1560_s21 = sshll.u32 %s1869_s18, 4  ;;  %s1561_s21 = int_to_ptr.vmem [resolvable:$true] %s1560_s21 }
  0x2f   :  { %s1822_s22 = scalar_lea.vmem %s1561_s21, 256  ;;  %p1827_p3 = scmp.lt.s32.totalorder %s1561_s21, %s1561_s21 }
  0x30   :  { %p1823_p2 = scmp.ne.s32.totalorder %s1561_s21, %s1822_s22  ;;  %p1828_p4 = scmp.lt.s32.totalorder %s1822_s22, %s1822_s22 }
  0x32   :  { %p1829_p5 = por %p1828_p4, %p1827_p3 }
  0x34   :  { %p1830_p6 = pnand %p1829_p5, %p1823_p2 }
 0x100   :  { %v1923_v6 = vpop.f32.mrb[0].mxu0 }
 0x101   :  { %v1925_v7 = vpop.f32.mrb[1].mxu0  ;;  %v1938_v9 = vmul.f32 0.35355338, %v1923_v6 }
 0x102   :  { %129 = vrot.lane.b32.xlu0 %v1925_v7, %s1856_s1  ;;  %v1934_v8 = vmul.f32 0.35355338, %v1925_v7 }
 0x106   :  { %208 = vrot.lane.b32.xlu0 %v1923_v6, %s1856_s1 }
 0x10a   :  { %325 = vrot.lane.b32.xlu0 %v1925_v7, %s1857_s6 }
 0x10e   :  { %479 = vrot.lane.b32.xlu0 %v1925_v7, %s1858_s7 }
 0x112   :  { %557 = vrot.lane.b32.xlu0 %v1923_v6, %s1858_s7 }
 0x116   :  { %477 = vrot.lane.b32.xlu0 %v1934_v8, %s1859_s8 }
 0x11a   :  { %555 = vrot.lane.b32.xlu0 %v1938_v9, %s1859_s8 }
 0x174   :  { %v130_v10 = vpop.permute.xlu0 %129 }
 0x175   :  { %1643 = vmatpush3.xpose.msk.msra.mxu1 %vm131_vm2, %v130_v10 }
 0x176   :  { %1652 = vmatprep.subr.mxu1 %v1854_v5 }
 0x178   :  { %v209_v11 = vpop.permute.xlu0 %208  ;;  %1645 = vmatmul.mubr.msk.f32.vlgmr.msra.gmra.mrb[0].mxu1 %vm131_vm2, %v1934_v8 }
 0x179   :  { %1648 = vmatpush3.xpose.msk.msra.mxu0 %vm131_vm2, %v209_v11  ;;  %1654 = vmatprep.mubr.msk.f32.mxu1 %vm1855_vm1, %v1854_v5 }
 0x17a   :  { %1657 = vmatprep.subr.mxu0 %v1854_v5 }
 0x17c   :  { %1650 = vmatmul.mubr.msk.f32.vlgmr.msra.gmra.mrb[2].mxu0 %vm131_vm2, %v1938_v9  ;;  %v326_v12 = vpop.permute.xlu0 %325 }
 0x17d   :  { %1653 = vmatpush3.msra.mxu1 %v326_v12  ;;  %1659 = vmatprep.mubr.msk.f32.mxu0 %vm1855_vm1, %v1854_v5 }
 0x17e   :  { %1662 = vmatprep.subr.mxu1 %v1854_v5 }
 0x180   :  { %v480_v51 = vpop.permute.xlu0 %479 }
 0x184   :  { %v558_v53 = vpop.permute.xlu0 %557 }
 0x188   :  { %v478_v57 = vpop.permute.xlu0 %477 }
 0x18c   :  { %v556_v59 = vpop.permute.xlu0 %555 }
 0x24b   :  { %v203_v13 = vpop.f32.mrb[0].mxu1 }
 0x24c   :  { %v1646_v14 = vpop.f32.mrb[1].mxu1  ;;  %v285_v15 = vsel %vm131_vm2, %v203_v13, 0.0 }
 0x24d   :  { %286 = vadd.xlane.f32.xlu1 %v285_v15 }
 0x24f   :  { %v281_v16 = vpop.f32.mrb[2].mxu0 }
 0x250   :  { %v1651_v17 = vpop.f32.mrb[3].mxu0  ;;  %v288_v18 = vsel %vm131_vm2, %v281_v16, 0.0 }
 0x251   :  { %289 = vadd.xlane.f32.xlu1 %v288_v18 }
 0x262   :  { %401 = vrot.lane.b32.xlu1 %v1923_v6, %s1857_s6 }
 0x2da   :  { %v287_v19 = vpop.xlane.xlu1 %286 }
 0x2db   :  { %v291_v20 = vrot.slane %v287_v19, 4 }
 0x2dd   :  { %v292_v21 = vmax.f32 %v287_v19, %v291_v20 }
 0x2de   :  { %v290_v22 = vpop.xlane.xlu1 %289 }
 0x2df   :  { %v293_v23 = vrot.slane %v292_v21, 2  ;;  %v297_v24 = vrot.slane %v290_v22, 4 }
 0x2e1   :  { %v294_v25 = vmax.f32 %v292_v21, %v293_v23  ;;  %v298_v26 = vmax.f32 %v290_v22, %v297_v24 }
 0x2e2   :  { %v402_v27 = vpop.permute.xlu1 %401 }
 0x2e3   :  { %v295_v28 = vrot.slane %v294_v25, 1  ;;  %v299_v29 = vrot.slane %v298_v26, 2  ;;  %1658 = vmatpush3.msra.mxu0 %v402_v27 }
 0x2e4   :  { %1667 = vmatprep.subr.mxu0 %v1854_v5 }
 0x2e5   :  { %v296_v30 = vmax.f32 %v294_v25, %v295_v28  ;;  %v300_v31 = vmax.f32 %v298_v26, %v299_v29 }
 0x2e7   :  { %v303_v32 = vsub.f32 %v287_v19, %v296_v30  ;;  %v301_v33 = vrot.slane %v300_v31, 1 }
 0x2e9   :  { %v305_v34 = vmul.f32 1.442695, %v303_v32  ;;  %v302_v35 = vmax.f32 %v300_v31, %v301_v33 }
 0x2eb   :  { %1746 = vpow2.f32 %v305_v34  ;;  %v304_v36 = vsub.f32 %v290_v22, %v302_v35 }
 0x2ed   :  { %v307_v37 = vmul.f32 1.442695, %v304_v36 }
 0x2ef   :  { %1748 = vpow2.f32 %v307_v37 }
 0x2f5   :  { %v1747_v38 = vpop.eup %1746 }
 0x2f6   :  { %v309_v39 = vrot.slane %v1747_v38, 4 }
 0x2f8   :  { %v310_v40 = vadd.f32 %v1747_v38, %v309_v39 }
 0x2f9   :  { %v1749_v41 = vpop.eup %1748 }
 0x2fa   :  { %v315_v42 = vrot.slane %v1749_v41, 4  ;;  %v311_v43 = vrot.slane %v310_v40, 2 }
 0x2fc   :  { %v312_v44 = vadd.f32 %v311_v43, %v310_v40  ;;  %v316_v45 = vadd.f32 %v1749_v41, %v315_v42 }
 0x2fe   :  { %v313_v46 = vrot.slane %v312_v44, 1  ;;  %v317_v47 = vrot.slane %v316_v45, 2 }
 0x300   :  { %v314_v48 = vadd.f32 %v313_v46, %v312_v44  ;;  %v318_v49 = vadd.f32 %v317_v47, %v316_v45 }
 0x302   :  { %1750 = vrcp.f32 %v314_v48  ;;  %v319_v50 = vrot.slane %v318_v49, 1 }
 0x304   :  { %v320_v52 = vadd.f32 %v319_v50, %v318_v49 }
 0x306   :  { %1752 = vrcp.f32 %v320_v52 }
 0x30c   :  { %v1751_v54 = vpop.eup %1750 }
 0x30d   :  { %v323_v55 = vmul.f32 %v1751_v54, %v1747_v38 }
 0x30f   :  { %1655 = vmatmul.mubr.msk.f32.vlgmr.msra.gmra.mrb[2].mxu1 %vm131_vm2, %v323_v55 }
 0x310   :  { %v1753_v56 = vpop.eup %1752  ;;  %1663 = vmatpush3.xpose.msk.msra.mxu1 %vm131_vm2, %v480_v51  ;;  %1664 = vmatprep.mubr.msk.f32.mxu1 %vm1855_vm1, %v1854_v5 }
 0x311   :  { %v324_v58 = vmul.f32 %v1753_v56, %v1749_v41  ;;  %1672 = vmatprep.subr.mxu1 %v1854_v5 }
 0x313   :  { %1660 = vmatmul.mubr.msk.f32.vlgmr.msra.gmra.mrb[4].mxu0 %vm131_vm2, %v324_v58  ;;  %1665 = vmatmul.mubr.msk.f32.vlgmr.msra.gmra.mrb[4].mxu1 %vm131_vm2, %v478_v57 }
 0x314   :  { %1668 = vmatpush3.xpose.msk.msra.mxu0 %vm131_vm2, %v558_v53  ;;  %1669 = vmatprep.mubr.msk.f32.mxu0 %vm1855_vm1, %v1854_v5 }
 0x315   :  { %1677 = vmatprep.subr.mxu0 %v1854_v5  ;;  %1674 = vmatprep.mubr.msk.f32.mxu1 %vm1855_vm1, %v1854_v5 }
 0x317   :  { %1670 = vmatmul.mubr.msk.f32.vlgmr.msra.gmra.mrb[6].mxu0 %vm131_vm2, %v556_v59 }
 0x318   :  { %1679 = vmatprep.mubr.msk.f32.mxu0 %vm1855_vm1, %v1854_v5 }
 0x3e2   :  { %v1975_v60 = vpop.f32.mrb[2].mxu1 }
 0x3e3   :  { %v1656_v61 = vpop.f32.mrb[3].mxu1 }
 0x3e6   :  { %v1977_v62 = vpop.f32.mrb[4].mxu0  ;;  %v551_v63 = vpop.f32.mrb[4].mxu1 }
 0x3e7   :  { %v1661_v0 = vpop.f32.mrb[5].mxu0  ;;  %v1666_v1 = vpop.f32.mrb[5].mxu1  ;;  %v633_v2 = vsel %vm131_vm2, %v551_v63, 0.0 }
 0x3e8   :  { %634 = vadd.xlane.f32.xlu1 %v633_v2 }
 0x3ea   :  { %v629_v3 = vpop.f32.mrb[6].mxu0 }
 0x3eb   :  { %v1671_v4 = vpop.f32.mrb[7].mxu0  ;;  %v636_v10 = vsel %vm131_vm2, %v629_v3, 0.0 }
 0x3ec   :  { %637 = vadd.xlane.f32.xlu0 %v636_v10 }
 0x3f9   :  { %749 = vrot.lane.b32.xlu1 %v1923_v6, %s1860_s9 }
 0x3fd   :  { %827 = vrot.lane.b32.xlu1 %v1925_v7, %s1861_s10 }
 0x401   :  { %825 = vrot.lane.b32.xlu1 %v1934_v8, %s1862_s11 }
 0x402   :  { %673 = vrot.lane.b32.xlu0 %v1925_v7, %s1860_s9 }
 0x406   :  { %905 = vrot.lane.b32.xlu0 %v1923_v6, %s1861_s10 }
 0x40a   :  { %903 = vrot.lane.b32.xlu0 %v1938_v9, %s1862_s11 }
 0x475   :  { %v635_v11 = vpop.xlane.xlu1 %634 }
 0x476   :  { %v639_v12 = vrot.slane %v635_v11, 4 }
 0x478   :  { %v640_v13 = vmax.f32 %v635_v11, %v639_v12 }
 0x479   :  { %v638_v14 = vpop.xlane.xlu0 %637  ;;  %v750_v15 = vpop.permute.xlu1 %749 }
 0x47a   :  { %v641_v16 = vrot.slane %v640_v13, 2  ;;  %v645_v17 = vrot.slane %v638_v14, 4  ;;  %1678 = vmatpush3.msra.mxu0 %v750_v15 }
 0x47b   :  { %1687 = vmatprep.subr.mxu0 %v1854_v5 }
 0x47c   :  { %v642_v18 = vmax.f32 %v640_v13, %v641_v16  ;;  %v646_v19 = vmax.f32 %v638_v14, %v645_v17 }
 0x47d   :  { %v674_v20 = vpop.permute.xlu0 %673  ;;  %v828_v46 = vpop.permute.xlu1 %827 }
 0x47e   :  { %v643_v21 = vrot.slane %v642_v18, 1  ;;  %v647_v22 = vrot.slane %v646_v19, 2  ;;  %1673 = vmatpush3.msra.mxu1 %v674_v20 }
 0x47f   :  { %1682 = vmatprep.subr.mxu1 %v1854_v5 }
 0x480   :  { %v644_v23 = vmax.f32 %v642_v18, %v643_v21  ;;  %v648_v24 = vmax.f32 %v646_v19, %v647_v22 }
 0x481   :  { %v906_v49 = vpop.permute.xlu0 %905  ;;  %v826_v51 = vpop.permute.xlu1 %825 }
 0x482   :  { %v651_v25 = vsub.f32 %v635_v11, %v644_v23  ;;  %v649_v26 = vrot.slane %v648_v24, 1 }
 0x484   :  { %v653_v27 = vmul.f32 1.442695, %v651_v25  ;;  %v650_v28 = vmax.f32 %v648_v24, %v649_v26 }
 0x485   :  { %v904_v52 = vpop.permute.xlu0 %903 }
 0x486   :  { %1754 = vpow2.f32 %v653_v27  ;;  %v652_v29 = vsub.f32 %v638_v14, %v650_v28 }
 0x488   :  { %v655_v30 = vmul.f32 1.442695, %v652_v29 }
 0x48a   :  { %1756 = vpow2.f32 %v655_v30 }
 0x490   :  { %v1755_v31 = vpop.eup %1754 }
 0x491   :  { %v657_v32 = vrot.slane %v1755_v31, 4 }
 0x493   :  { %v658_v33 = vadd.f32 %v1755_v31, %v657_v32 }
 0x494   :  { %v1757_v34 = vpop.eup %1756 }
 0x495   :  { %v663_v35 = vrot.slane %v1757_v34, 4  ;;  %v659_v36 = vrot.slane %v658_v33, 2 }
 0x497   :  { %v660_v37 = vadd.f32 %v659_v36, %v658_v33  ;;  %v664_v38 = vadd.f32 %v1757_v34, %v663_v35 }
 0x499   :  { %v661_v39 = vrot.slane %v660_v37, 1  ;;  %v665_v40 = vrot.slane %v664_v38, 2 }
 0x49b   :  { %v662_v41 = vadd.f32 %v661_v39, %v660_v37  ;;  %v666_v42 = vadd.f32 %v665_v40, %v664_v38 }
 0x49d   :  { %1758 = vrcp.f32 %v662_v41  ;;  %v667_v43 = vrot.slane %v666_v42, 1 }
 0x49f   :  { %v668_v44 = vadd.f32 %v667_v43, %v666_v42 }
 0x4a1   :  { %1760 = vrcp.f32 %v668_v44 }
 0x4a7   :  { %v1759_v45 = vpop.eup %1758 }
 0x4a8   :  { %v671_v47 = vmul.f32 %v1759_v45, %v1755_v31 }
 0x4aa   :  { %1675 = vmatmul.mubr.msk.f32.vlgmr.msra.gmra.mrb[6].mxu1 %vm131_vm2, %v671_v47 }
 0x4ab   :  { %v1761_v48 = vpop.eup %1760  ;;  %1683 = vmatpush3.xpose.msk.msra.mxu1 %vm131_vm2, %v828_v46  ;;  %1684 = vmatprep.mubr.msk.f32.mxu1 %vm1855_vm1, %v1854_v5 }
 0x4ac   :  { %v672_v50 = vmul.f32 %v1761_v48, %v1757_v34  ;;  %1692 = vmatprep.subr.mxu1 %v1854_v5 }
 0x4ae   :  { %1680 = vmatmul.mubr.msk.f32.vlgmr.msra.gmra.mrb[8].mxu0 %vm131_vm2, %v672_v50  ;;  %1685 = vmatmul.mubr.msk.f32.vlgmr.msra.gmra.mrb[8].mxu1 %vm131_vm2, %v826_v51 }
 0x4af   :  { %1688 = vmatpush3.xpose.msk.msra.mxu0 %vm131_vm2, %v906_v49  ;;  %1689 = vmatprep.mubr.msk.f32.mxu0 %vm1855_vm1, %v1854_v5 }
 0x4b0   :  { %1697 = vmatprep.subr.mxu0 %v1854_v5  ;;  %1694 = vmatprep.mubr.msk.f32.mxu1 %vm1855_vm1, %v1854_v5 }
 0x4b2   :  { %1690 = vmatmul.mubr.msk.f32.vlgmr.msra.gmra.mrb[10].mxu0 %vm131_vm2, %v904_v52 }
 0x4b3   :  { %1699 = vmatprep.mubr.msk.f32.mxu0 %vm1855_vm1, %v1854_v5 }
 0x57d   :  { %v2005_v53 = vpop.f32.mrb[6].mxu1 }
 0x57e   :  { %v1676_v54 = vpop.f32.mrb[7].mxu1 }
 0x581   :  { %v2007_v55 = vpop.f32.mrb[8].mxu0  ;;  %v899_v56 = vpop.f32.mrb[8].mxu1 }
 0x582   :  { %v1681_v57 = vpop.f32.mrb[9].mxu0  ;;  %v1686_v58 = vpop.f32.mrb[9].mxu1  ;;  %v981_v59 = vsel %vm131_vm2, %v899_v56, 0.0 }
 0x583   :  { %982 = vadd.xlane.f32.xlu1 %v981_v59 }
 0x585   :  { %v977_v61 = vpop.f32.mrb[10].mxu0 }
 0x586   :  { %v1691_v63 = vpop.f32.mrb[11].mxu0  ;;  %v984_v0 = vsel %vm131_vm2, %v977_v61, 0.0 }
 0x587   :  { %985 = vadd.xlane.f32.xlu0 %v984_v0 }
 0x594   :  { %1097 = vrot.lane.b32.xlu1 %v1923_v6, %s1863_s12 }
 0x598   :  { %1175 = vrot.lane.b32.xlu1 %v1925_v7, %s1864_s13 }
 0x59c   :  { %1173 = vrot.lane.b32.xlu1 %v1934_v8, %s1865_s14 }
 0x59d   :  { %1021 = vrot.lane.b32.xlu0 %v1925_v7, %s1863_s12 }
 0x5a1   :  { %1253 = vrot.lane.b32.xlu0 %v1923_v6, %s1864_s13 }
 0x5a5   :  { %1251 = vrot.lane.b32.xlu0 %v1938_v9, %s1865_s14 }
 0x610   :  { %v983_v1 = vpop.xlane.xlu1 %982 }
 0x611   :  { %v987_v2 = vrot.slane %v983_v1, 4 }
 0x613   :  { %v988_v3 = vmax.f32 %v983_v1, %v987_v2 }
 0x614   :  { %v986_v4 = vpop.xlane.xlu0 %985  ;;  %v1098_v10 = vpop.permute.xlu1 %1097 }
 0x615   :  { %v989_v11 = vrot.slane %v988_v3, 2  ;;  %v993_v12 = vrot.slane %v986_v4, 4  ;;  %1698 = vmatpush3.msra.mxu0 %v1098_v10 }
 0x616   :  { %1707 = vmatprep.subr.mxu0 %v1854_v5 }
 0x617   :  { %v990_v13 = vmax.f32 %v988_v3, %v989_v11  ;;  %v994_v14 = vmax.f32 %v986_v4, %v993_v12 }
 0x618   :  { %v1022_v15 = vpop.permute.xlu0 %1021  ;;  %v1176_v39 = vpop.permute.xlu1 %1175 }
 0x619   :  { %v991_v8 = vrot.slane %v990_v13, 1  ;;  %v995_v16 = vrot.slane %v994_v14, 2  ;;  %1693 = vmatpush3.msra.mxu1 %v1022_v15 }
 0x61a   :  { %1702 = vmatprep.subr.mxu1 %v1854_v5 }
 0x61b   :  { %v992_v17 = vmax.f32 %v990_v13, %v991_v8  ;;  %v996_v9 = vmax.f32 %v994_v14, %v995_v16 }
 0x61c   :  { %v1254_v42 = vpop.permute.xlu0 %1253  ;;  %v1174_v44 = vpop.permute.xlu1 %1173 }
 0x61d   :  { %v999_v18 = vsub.f32 %v983_v1, %v992_v17  ;;  %v997_v19 = vrot.slane %v996_v9, 1 }
 0x61f   :  { %v1001_v20 = vmul.f32 1.442695, %v999_v18  ;;  %v998_v21 = vmax.f32 %v996_v9, %v997_v19 }
 0x620   :  { %v1252_v45 = vpop.permute.xlu0 %1251 }
 0x621   :  { %1762 = vpow2.f32 %v1001_v20  ;;  %v1000_v22 = vsub.f32 %v986_v4, %v998_v21 }
 0x623   :  { %v1003_v23 = vmul.f32 1.442695, %v1000_v22 }
 0x625   :  { %1764 = vpow2.f32 %v1003_v23 }
 0x62b   :  { %v1763_v24 = vpop.eup %1762 }
 0x62c   :  { %v1005_v25 = vrot.slane %v1763_v24, 4 }
 0x62e   :  { %v1006_v26 = vadd.f32 %v1763_v24, %v1005_v25 }
 0x62f   :  { %v1765_v27 = vpop.eup %1764 }
 0x630   :  { %v1011_v28 = vrot.slane %v1765_v27, 4  ;;  %v1007_v29 = vrot.slane %v1006_v26, 2 }
 0x632   :  { %v1008_v30 = vadd.f32 %v1007_v29, %v1006_v26  ;;  %v1012_v31 = vadd.f32 %v1765_v27, %v1011_v28 }
 0x634   :  { %v1009_v32 = vrot.slane %v1008_v30, 1  ;;  %v1013_v33 = vrot.slane %v1012_v31, 2 }
 0x636   :  { %v1010_v34 = vadd.f32 %v1009_v32, %v1008_v30  ;;  %v1014_v35 = vadd.f32 %v1013_v33, %v1012_v31 }
 0x638   :  { %1766 = vrcp.f32 %v1010_v34  ;;  %v1015_v36 = vrot.slane %v1014_v35, 1 }
 0x63a   :  { %v1016_v37 = vadd.f32 %v1015_v36, %v1014_v35 }
 0x63c   :  { %1768 = vrcp.f32 %v1016_v37 }
 0x642   :  { %v1767_v38 = vpop.eup %1766 }
 0x643   :  { %v1019_v40 = vmul.f32 %v1767_v38, %v1763_v24 }
 0x645   :  { %1695 = vmatmul.mubr.msk.f32.vlgmr.msra.gmra.mrb[10].mxu1 %vm131_vm2, %v1019_v40 }
 0x646   :  { %v1769_v41 = vpop.eup %1768  ;;  %1703 = vmatpush3.xpose.msk.msra.mxu1 %vm131_vm2, %v1176_v39  ;;  %1704 = vmatprep.mubr.msk.f32.mxu1 %vm1855_vm1, %v1854_v5 }
 0x647   :  { %v1020_v43 = vmul.f32 %v1769_v41, %v1765_v27  ;;  %1712 = vmatprep.subr.mxu1 %v1854_v5 }
 0x649   :  { %1700 = vmatmul.mubr.msk.f32.vlgmr.msra.gmra.mrb[12].mxu0 %vm131_vm2, %v1020_v43  ;;  %1705 = vmatmul.mubr.msk.f32.vlgmr.msra.gmra.mrb[12].mxu1 %vm131_vm2, %v1174_v44 }
 0x64a   :  { %1708 = vmatpush3.xpose.msk.msra.mxu0 %vm131_vm2, %v1254_v42  ;;  %1709 = vmatprep.mubr.msk.f32.mxu0 %vm1855_vm1, %v1854_v5 }
 0x64b   :  { %1717 = vmatprep.subr.mxu0 %v1854_v5  ;;  %1714 = vmatprep.mubr.msk.f32.mxu1 %vm1855_vm1, %v1854_v5 }
 0x64d   :  { %1710 = vmatmul.mubr.msk.f32.vlgmr.msra.gmra.mrb[14].mxu0 %vm131_vm2, %v1252_v45 }
 0x64e   :  { %1719 = vmatprep.mubr.msk.f32.mxu0 %vm1855_vm1, %v1854_v5 }
 0x718   :  { %v1093_v46 = vpop.f32.mrb[10].mxu1 }
 0x719   :  { %v1696_v47 = vpop.f32.mrb[11].mxu1 }
 0x71c   :  { %v1169_v48 = vpop.f32.mrb[12].mxu0  ;;  %v1247_v49 = vpop.f32.mrb[12].mxu1 }
 0x71d   :  { %v1701_v50 = vpop.f32.mrb[13].mxu0  ;;  %v1706_v51 = vpop.f32.mrb[13].mxu1  ;;  %v1329_v52 = vsel %vm131_vm2, %v1247_v49, 0.0 }
 0x71e   :  { %1330 = vadd.xlane.f32.xlu1 %v1329_v52 }
 0x720   :  { %v1325_v54 = vpop.f32.mrb[14].mxu0 }
 0x721   :  { %v1711_v56 = vpop.f32.mrb[15].mxu0  ;;  %v1332_v57 = vsel %vm131_vm2, %v1325_v54, 0.0 }
 0x722   :  { %1333 = vadd.xlane.f32.xlu0 %v1332_v57 }
 0x72f   :  { %1445 = vrot.lane.b32.xlu1 %v1923_v6, %s1866_s15 }
 0x733   :  { %1523 = vrot.lane.b32.xlu1 %v2005_v53, %s1852_s20 }
 0x737   :  { %1531 = vrot.lane.b32.xlu1 %v1093_v46, %s1867_s16 }
 0x738   :  { %1369 = vrot.lane.b32.xlu0 %v1925_v7, %s1866_s15 }
 0x73c   :  { %1525 = vrot.lane.b32.xlu0 %v2007_v55, %s1852_s20 }
 0x740   :  { %1533 = vrot.lane.b32.xlu0 %v1169_v48, %s1867_s16 }
 0x7ab   :  { %v1331_v5 = vpop.xlane.xlu1 %1330 }
 0x7ac   :  { %v1335_v58 = vrot.slane %v1331_v5, 4 }
 0x7ae   :  { %v1336_v59 = vmax.f32 %v1331_v5, %v1335_v58 }
 0x7af   :  { %v1334_v61 = vpop.xlane.xlu0 %1333  ;;  %v1446_v63 = vpop.permute.xlu1 %1445 }
 0x7b0   :  { %v1337_v0 = vrot.slane %v1336_v59, 2  ;;  %v1341_v1 = vrot.slane %v1334_v61, 4  ;;  %1718 = vmatpush3.msra.mxu0 %v1446_v63 }
 0x7b2   :  { %v1338_v6 = vmax.f32 %v1336_v59, %v1337_v0  ;;  %v1342_v2 = vmax.f32 %v1334_v61, %v1341_v1 }
 0x7b3   :  { %v1370_v3 = vpop.permute.xlu0 %1369  ;;  %v1524_v36 = vpop.permute.xlu1 %1523 }
 0x7b4   :  { %v1339_v53 = vrot.slane %v1338_v6, 1  ;;  %v1343_v4 = vrot.slane %v1342_v2, 2  ;;  %1713 = vmatpush3.msra.mxu1 %v1370_v3  ;;  %v1545_v39 = vsel %vm131_vm2, %v1975_v60, %v1524_v36 }
 0x7b6   :  { %v1340_v10 = vmax.f32 %v1338_v6, %v1339_v53  ;;  %v1344_v7 = vmax.f32 %v1342_v2, %v1343_v4 }
 0x7b7   :  { %v1526_v37 = vpop.permute.xlu0 %1525  ;;  %v1532_v38 = vpop.permute.xlu1 %1531 }
 0x7b8   :  { %v1347_v11 = vsub.f32 %v1331_v5, %v1340_v10  ;;  %v1345_v12 = vrot.slane %v1344_v7, 1  ;;  %v1547_v40 = vsel %vm44_vm0, %v1545_v39, %v1532_v38  ;;  %v1546_v44 = vsel %vm131_vm2, %v1977_v62, %v1526_v37 }
 0x7ba   :  { %v1349_v55 = vmul.f32 1.442695, %v1347_v11  ;;  %v1346_v13 = vmax.f32 %v1344_v7, %v1345_v12 }
 0x7bb   :  { %v1534_v41 = vpop.permute.xlu0 %1533 }
 0x7bc   :  { %1770 = vpow2.f32 %v1349_v55  ;;  %v1348_v14 = vsub.f32 %v1334_v61, %v1346_v13  ;;  %v1548_v45 = vsel %vm44_vm0, %v1546_v44, %v1534_v41 }
 0x7be   :  { %v1351_v15 = vmul.f32 1.442695, %v1348_v14 }
 0x7c0   :  { %1772 = vpow2.f32 %v1351_v15 }
 0x7c6   :  { %v1771_v8 = vpop.eup %1770 }
 0x7c7   :  { %v1353_v16 = vrot.slane %v1771_v8, 4 }
 0x7c9   :  { %v1354_v17 = vadd.f32 %v1771_v8, %v1353_v16 }
 0x7ca   :  { %v1773_v9 = vpop.eup %1772 }
 0x7cb   :  { %v1359_v18 = vrot.slane %v1773_v9, 4  ;;  %v1355_v19 = vrot.slane %v1354_v17, 2 }
 0x7cd   :  { %v1356_v20 = vadd.f32 %v1355_v19, %v1354_v17  ;;  %v1360_v21 = vadd.f32 %v1773_v9, %v1359_v18 }
 0x7cf   :  { %v1357_v22 = vrot.slane %v1356_v20, 1  ;;  %v1361_v23 = vrot.slane %v1360_v21, 2 }
 0x7d1   :  { %v1358_v24 = vadd.f32 %v1357_v22, %v1356_v20  ;;  %v1362_v25 = vadd.f32 %v1361_v23, %v1360_v21 }
 0x7d3   :  { %1774 = vrcp.f32 %v1358_v24  ;;  %v1363_v26 = vrot.slane %v1362_v25, 1 }
 0x7d5   :  { %v1364_v27 = vadd.f32 %v1363_v26, %v1362_v25 }
 0x7d7   :  { %1776 = vrcp.f32 %v1364_v27 }
 0x7dd   :  { %v1775_v28 = vpop.eup %1774 }
 0x7de   :  { %v1367_v29 = vmul.f32 %v1775_v28, %v1771_v8 }
 0x7e0   :  { %1715 = vmatmul.mubr.msk.f32.vlgmr.msra.gmra.mrb[14].mxu1 %vm131_vm2, %v1367_v29 }
 0x7e1   :  { %v1777_v30 = vpop.eup %1776 }
 0x7e2   :  { %v1368_v31 = vmul.f32 %v1777_v30, %v1773_v9 }
 0x7e4   :  { %1720 = vmatmul.mubr.msk.f32.vlgmr.msra.gmra.mrb[16].mxu0 %vm131_vm2, %v1368_v31 }
 0x8b3   :  { %v1441_v32 = vpop.f32.mrb[14].mxu1 }
 0x8b4   :  { %1539 = vrot.lane.b32.xlu1 %v1441_v32, %s1868_s17  ;;  %v1716_v33 = vpop.f32.mrb[15].mxu1 }
 0x8b7   :  { %v1517_v34 = vpop.f32.mrb[16].mxu0 }
 0x8b8   :  { %1541 = vrot.lane.b32.xlu0 %v1517_v34, %s1868_s17  ;;  %v1721_v35 = vpop.f32.mrb[17].mxu0 }
 0x926   :  { %v1540_v42 = vpop.permute.xlu1 %1539 }
 0x927   :  { %v1550_v43 = vsel %vm1549_vm3, %v1547_v40, %v1540_v42 }
 0x928   :  { %1553 = vst.msk [vmem:[#allocation7] sm:$0xff] %vm1552_vm4, %v1550_v43 }
 0x92a   :  { %v1542_v46 = vpop.permute.xlu0 %1541 }
 0x92b   :  { %v1551_v47 = vsel %vm1549_vm3, %v1548_v45, %v1542_v46 }
 0x92c   :  { %1554 = vst.msk [vmem:[#allocation7 + $0x8] sm:$0xff] %vm1552_vm4, %v1551_v47 }
 0x92d   :  { %1833 = shalt.err (!%p1830_p6)
}
 0x92e   :  { %s1834_s25 = scalar_lea.hbm %s2068_s2, 256 }
 0x92f   :  { %p1835_p7 = scmp.ne.s32.totalorder %s2068_s2, %s1834_s25  ;;  %p1838_p8 = scmp.lt.u32.totalorder %s1834_s25, %s2068_s2 }
 0x931   :  { %p1840_p9 = pnand %p1838_p8, %p1835_p7 }
 0x933   :  { %1843 = shalt.err (!%p1840_p9)
}
 0x934   :  { %1566 = dma.vmem_to_hbm [thread:$0]  %s1561_s21, 256, %s2068_s2, [#allocation4], %s1851_s19, %s1851_s19, %s1852_s20  }
 0x935   :  { %1848 = dma.done.wait [#allocation4], 256  }
 0x936   :  { %1849 = vsyncadd [#allocation4], 4294967040 }
 0x937   :  { %1570 = vsyncpa [#allocation3], 1 }
 0x938   :  { %1571 = vsyncpa [#allocation6], 1 }
 0x939   :  { %1572 = vsyncpa [#allocation4], 1 }

</bundles_post_ra>
